<compile_context>
chip_gen: v7x
topology: tpu7x:2x2x1
jax: 0.10.0
libtpu: 0.0.40
codegen_flags: <defaults>
</compile_context>

<pallas_src>
import functools

import jax
import jax.numpy as jnp
import numpy as np
from jax.experimental import pallas as pl
from jax.experimental.pallas import tpu as pltpu


def _round_up(x, m):
    return (x + m - 1) // m * m


def _mhca_kernel(x_ref, y_ref, wq_ref, wk_ref, wv_ref, wf_ref, bqkv_ref, bf_ref,
                 o_ref, *, num_heads, head_dim, nb, seq, c_out, c_pad):
    m = nb * seq
    c_in = x_ref.shape[-1]

    x = x_ref[...].reshape(m, c_in)                       # bf16 (M, C_in)
    y = y_ref[...].reshape(m, c_in)

    # Projections (bf16 MXU operands, f32 accumulation).  bq carries the folded
    # 1/sqrt(head_dim) scale (done once in the wrapper); bk/bv are plain biases.
    q = jnp.dot(x, wq_ref[...], preferred_element_type=jnp.float32) + bqkv_ref[0:1, :]
    k = jnp.dot(y, wk_ref[...], preferred_element_type=jnp.float32) + bqkv_ref[1:2, :]
    v = jnp.dot(y, wv_ref[...], preferred_element_type=jnp.float32) + bqkv_ref[2:3, :]

    q3 = q.reshape(nb, seq, c_out)
    k3 = k.reshape(nb, seq, c_out)
    v3 = v.reshape(nb, seq, c_out)

    # Block-diagonal head mask: mask[h, c] = 1 iff channel c belongs to head h.
    h_idx = jax.lax.broadcasted_iota(jnp.int32, (num_heads, c_out), 0)
    c_idx = jax.lax.broadcasted_iota(jnp.int32, (num_heads, c_out), 1)
    lo = h_idx * head_dim
    mask = jnp.where((c_idx >= lo) & (c_idx < lo + head_dim),
                     jnp.float32(1.0), jnp.float32(0.0))          # (H, C_out)

    # Head expansion: k_exp[n, h*T+s, c] = k3[n, s, c] * mask[h, c] (same for v).
    # This lets all heads be computed with two single-batch-dim einsums — the per-head
    # structure is carried by the block-diagonal mask, so there is no per-head loop,
    # no 4-lane slicing, and no multi-batch dot_general / middle-dim transposes.
    k_exp = (k3[:, None, :, :] * mask[None, :, None, :]).reshape(
        nb, num_heads * seq, c_out)
    v_exp = (v3[:, None, :, :] * mask[None, :, None, :]).reshape(
        nb, num_heads * seq, c_out)

    # scores[n, t, h*T+s] = <q_head_h[n,t,:], k_head_h[n,s,:]> / sqrt(head_dim)
    s = jnp.einsum('ntc,nmc->ntm', q3, k_exp,
                   preferred_element_type=jnp.float32)            # (NB, T, H*T)
    s4 = s.reshape(nb, seq, num_heads, seq)
    s4 = s4 - jnp.max(s4, axis=-1, keepdims=True)
    p4 = jnp.exp(s4)
    p4 = p4 * pl.reciprocal(jnp.sum(p4, axis=-1, keepdims=True), approx=True)
    # dropout(p=0.1) on the attention map is identity in eval mode.
    p = p4.reshape(nb, seq, num_heads * seq)

    # ctx[n, t, c] = sum_s p_head_{h(c)}[n, t, s] * v[n, s, c]
    ctx = jnp.einsum('ntm,nmc->ntc', p, v_exp,
                     preferred_element_type=jnp.float32)          # (NB, T, C_out)

    # Output projection: lane-dense (C_pad = 128) weight with bf added; bf16 store.
    out = jnp.dot(ctx.reshape(m, c_out).astype(jnp.bfloat16), wf_ref[...],
                  preferred_element_type=jnp.float32) + bf_ref[...]
    o_ref[...] = out.reshape(nb, seq, c_pad).astype(o_ref.dtype)


def prepare_mhca_params(params, *, num_heads):
    """One-time parameter prep (hoisted out of the per-call path)."""
    C_in, C_out = params["wq"].shape
    head_dim = C_out // num_heads
    assert head_dim * num_heads == C_out
    C_pad = _round_up(C_out, 128)
    inv_scale = jnp.float32(1.0 / np.sqrt(head_dim))

    def b1d(b):
        return jnp.asarray(b, jnp.float32).reshape(-1)

    wq = (params["wq"].astype(jnp.float32) * inv_scale).astype(jnp.bfloat16)
    wk = params["wk"].astype(jnp.bfloat16)
    wv = params["wv"].astype(jnp.bfloat16)
    wf = jnp.zeros((C_out, C_pad), jnp.float32).at[:, :C_out].set(
        params["wf"].astype(jnp.float32)).astype(jnp.bfloat16)
    bqkv = jnp.stack([b1d(params["bq"]) * inv_scale,
                      b1d(params["bk"]),
                      b1d(params["bv"])], axis=0)                  # (3, C_out) f32
    bf = jnp.zeros((1, C_pad), jnp.float32).at[0, :C_out].set(b1d(params["bf"]))

    return dict(wq=wq, wk=wk, wv=wv, wf=wf, bqkv=bqkv, bf=bf,
                num_heads=num_heads, head_dim=head_dim,
                c_in=C_in, c_out=C_out, c_pad=C_pad)


def multi_head_cross_attention(x, y, prepared, *, block_rows=1024):
    """x, y: (N, T, C_in).  `prepared` comes from prepare_mhca_params."""
    N, T, C_in = x.shape
    assert C_in == prepared["c_in"]
    C_out, C_pad = prepared["c_out"], prepared["c_pad"]
    num_heads, head_dim = prepared["num_heads"], prepared["head_dim"]

    # Batch blocking: ~block_rows projection rows (NB*T) per grid step, but keep at
    # least 2 grid steps when N permits so the "parallel" axis splits across the two
    # TensorCores on v7x (no-op on v5e/v6e).
    NB = max(1, block_rows // max(T, 1))
    NB = min(NB, max(1, (N + 1) // 2))
    num_blocks = int(pl.cdiv(N, NB))
    N_pad = num_blocks * NB

    def prep_act(a):
        a = a.astype(jnp.bfloat16)
        if N_pad != N:
            a = jnp.pad(a, ((0, N_pad - N), (0, 0), (0, 0)))
        return a

    xp, yp = prep_act(x), prep_act(y)

    kernel = functools.partial(_mhca_kernel, num_heads=num_heads, head_dim=head_dim,
                               nb=NB, seq=T, c_out=C_out, c_pad=C_pad)

    act_spec = pl.BlockSpec((NB, T, C_in), lambda i: (i, 0, 0))

    def full_spec(shape):
        return pl.BlockSpec(shape, lambda i, _n=len(shape): (0,) * _n)

    out = pl.pallas_call(
        kernel,
        out_shape=jax.ShapeDtypeStruct((N_pad, T, C_pad), jnp.bfloat16),
        grid_spec=pltpu.PrefetchScalarGridSpec(
            num_scalar_prefetch=0,
            grid=(num_blocks,),
            in_specs=[act_spec, act_spec,
                      full_spec((C_in, C_out)),     # wq (scale folded)
                      full_spec((C_in, C_out)),     # wk
                      full_spec((C_in, C_out)),     # wv
                      full_spec((C_out, C_pad)),    # wf (lane-dense padded)
                      full_spec((3, C_out)),        # bq/bk/bv stacked
                      full_spec((1, C_pad))],       # bf (lane-dense padded)
            out_specs=pl.BlockSpec((NB, T, C_pad), lambda i: (i, 0, 0))),
        compiler_params=pltpu.CompilerParams(
            dimension_semantics=("parallel",)),
    )(xp, yp, prepared["wq"], prepared["wk"], prepared["wv"], prepared["wf"],
      prepared["bqkv"], prepared["bf"])

    return out[:N, :, :C_out].astype(x.dtype)


def _reference(x, y, params, *, num_heads):
    """Pure-JAX f32 reference mirroring the PyTorch forward (dropout in eval mode)."""
    N, T, _ = x.shape
    C_out = params["wq"].shape[1]
    D = C_out // num_heads
    scale = jnp.sqrt(jnp.float32(D))

    def proj(a, w, b):
        return a.astype(jnp.float32) @ w.astype(jnp.float32) + jnp.asarray(b, jnp.float32)

    q = proj(x, params["wq"], params["bq"]).reshape(N, T, num_heads, D).transpose(0, 2, 1, 3)
    k = proj(y, params["wk"], params["bk"]).reshape(N, T, num_heads, D).transpose(0, 2, 1, 3)
    v = proj(y, params["wv"], params["bv"]).reshape(N, T, num_heads, D).transpose(0, 2, 1, 3)
    attn = jnp.einsum("nhtd,nhsd->nhts", q, k) / scale
    attn = jax.nn.softmax(attn, axis=-1)
    ctx = jnp.einsum("nhts,nhsd->nhtd", attn, v)
    ctx = ctx.transpose(0, 2, 1, 3).reshape(N, T, C_out)
    return ctx @ params["wf"].astype(jnp.float32) + jnp.asarray(params["bf"], jnp.float32)


if __name__ == "__main__":
    # Shapes consistent with the module: N=2, T=8, in_channels=32, out_channels=32,
    # num_heads=8 -> head_dim=4.
    N, T, C_in, C_out, H = 2, 8, 32, 32, 8

    key = jax.random.PRNGKey(0)
    keys = jax.random.split(key, 10)

    # nn.Linear-style uniform(-1/sqrt(fan_in), +1/sqrt(fan_in)) init.
    def lin_init(kw, kb, fan_in, fan_out):
        bound = 1.0 / np.sqrt(fan_in)
        w = jax.random.uniform(kw, (fan_in, fan_out), jnp.float32, -bound, bound)
        b = jax.random.uniform(kb, (fan_out,), jnp.float32, -bound, bound)
        return w, b

    wq, bq = lin_init(keys[0], keys[1], C_in, C_out)
    wk, bk = lin_init(keys[2], keys[3], C_in, C_out)
    wv, bv = lin_init(keys[4], keys[5], C_in, C_out)
    wf, bf = lin_init(keys[6], keys[7], C_out, C_out)
    params = dict(wq=wq, bq=bq, wk=wk, bk=bk, wv=wv, bv=bv, wf=wf, bf=bf)

    x = jax.random.normal(keys[8], (N, T, C_in), jnp.float32)
    y = jax.random.normal(keys[9], (N, T, C_in), jnp.float32)

    prepared = prepare_mhca_params(params, num_heads=H)   # hoisted, reused across calls
    out = multi_head_cross_attention(x, y, prepared)
    out = jax.block_until_ready(out)

    ref = jax.block_until_ready(_reference(x, y, params, num_heads=H))
    # bf16 MXU operands, bf16 output writeback, approx reciprocal -> loosened tolerance.
    np.testing.assert_allclose(np.asarray(out), np.asarray(ref), rtol=3e-2, atol=3e-2)

    print("KERNEL_OK")
</pallas_src>

<mosaic_0001>
module attributes {stable_mosaic.version = 11 : i64} {
  func.func @_mhca_kernel(%arg0: i32, %arg1: memref<1x8x32xbf16, #tpu.memory_space<vmem>>, %arg2: memref<1x8x32xbf16, #tpu.memory_space<vmem>>, %arg3: memref<32x32xbf16, #tpu.memory_space<vmem>>, %arg4: memref<32x32xbf16, #tpu.memory_space<vmem>>, %arg5: memref<32x32xbf16, #tpu.memory_space<vmem>>, %arg6: memref<32x128xbf16, #tpu.memory_space<vmem>>, %arg7: memref<3x32xf32, #tpu.memory_space<vmem>>, %arg8: memref<1x128xf32, #tpu.memory_space<vmem>>, %arg9: memref<1x8x128xbf16, #tpu.memory_space<vmem>>) attributes {dimension_semantics = [#tpu.dimension_semantics<parallel>], iteration_bounds = array<i64: 2>, scalar_prefetch = 0 : i64, scratch_operands = 0 : i64, tpu.core_type = #tpu.core_type<tc>, window_params = [{transform_indices = @transform_0, window_bounds = array<i64: 1, 8, 32>}, {transform_indices = @transform_1, window_bounds = array<i64: 1, 8, 32>}, {pipeline_mode = #tpu.pipeline_mode<synchronous>, transform_indices = @transform_2, window_bounds = array<i64: 32, 32>}, {pipeline_mode = #tpu.pipeline_mode<synchronous>, transform_indices = @transform_3, window_bounds = array<i64: 32, 32>}, {pipeline_mode = #tpu.pipeline_mode<synchronous>, transform_indices = @transform_4, window_bounds = array<i64: 32, 32>}, {pipeline_mode = #tpu.pipeline_mode<synchronous>, transform_indices = @transform_5, window_bounds = array<i64: 32, 128>}, {pipeline_mode = #tpu.pipeline_mode<synchronous>, transform_indices = @transform_6, window_bounds = array<i64: 3, 32>}, {pipeline_mode = #tpu.pipeline_mode<synchronous>, transform_indices = @transform_7, window_bounds = array<i64: 1, 128>}, {transform_indices = @transform_8, window_bounds = array<i64: 1, 8, 128>}]} {
    %c0 = arith.constant 0 : index
    %c0_0 = arith.constant 0 : index
    %c0_1 = arith.constant 0 : index
    %0 = vector.load %arg1[%c0, %c0_0, %c0_1] : memref<1x8x32xbf16, #tpu.memory_space<vmem>>, vector<1x8x32xbf16>
    %1 = vector.shape_cast %0 : vector<1x8x32xbf16> to vector<8x32xbf16>
    %c0_2 = arith.constant 0 : index
    %c0_3 = arith.constant 0 : index
    %c0_4 = arith.constant 0 : index
    %2 = vector.load %arg2[%c0_2, %c0_3, %c0_4] : memref<1x8x32xbf16, #tpu.memory_space<vmem>>, vector<1x8x32xbf16>
    %3 = vector.shape_cast %2 : vector<1x8x32xbf16> to vector<8x32xbf16>
    %c0_5 = arith.constant 0 : index
    %c0_6 = arith.constant 0 : index
    %4 = vector.load %arg3[%c0_5, %c0_6] : memref<32x32xbf16, #tpu.memory_space<vmem>>, vector<32x32xbf16>
    %cst = arith.constant dense<0.000000e+00> : vector<8x32xf32>
    %5 = tpu.matmul %1, %4, %cst {dimension_numbers = #tpu.dot_dimension_numbers<[1], [0], [0], [1], [0, 0, 1, 1], [], []>} : vector<8x32xbf16>, vector<32x32xbf16>, vector<8x32xf32> -> vector<8x32xf32>
    %c0_7 = arith.constant 0 : index
    %c0_8 = arith.constant 0 : index
    %6 = vector.load %arg7[%c0_7, %c0_8] : memref<3x32xf32, #tpu.memory_space<vmem>>, vector<1x32xf32>
    %7 = vector.broadcast %6 : vector<1x32xf32> to vector<8x32xf32>
    %8 = arith.addf %5, %7 : vector<8x32xf32>
    %c0_9 = arith.constant 0 : index
    %c0_10 = arith.constant 0 : index
    %9 = vector.load %arg4[%c0_9, %c0_10] : memref<32x32xbf16, #tpu.memory_space<vmem>>, vector<32x32xbf16>
    %cst_11 = arith.constant dense<0.000000e+00> : vector<8x32xf32>
    %10 = tpu.matmul %3, %9, %cst_11 {dimension_numbers = #tpu.dot_dimension_numbers<[1], [0], [0], [1], [0, 0, 1, 1], [], []>} : vector<8x32xbf16>, vector<32x32xbf16>, vector<8x32xf32> -> vector<8x32xf32>
    %c1 = arith.constant 1 : index
    %c0_12 = arith.constant 0 : index
    %11 = vector.load %arg7[%c1, %c0_12] : memref<3x32xf32, #tpu.memory_space<vmem>>, vector<1x32xf32>
    %12 = vector.broadcast %11 : vector<1x32xf32> to vector<8x32xf32>
    %13 = arith.addf %10, %12 : vector<8x32xf32>
    %c0_13 = arith.constant 0 : index
    %c0_14 = arith.constant 0 : index
    %14 = vector.load %arg5[%c0_13, %c0_14] : memref<32x32xbf16, #tpu.memory_space<vmem>>, vector<32x32xbf16>
    %cst_15 = arith.constant dense<0.000000e+00> : vector<8x32xf32>
    %15 = tpu.matmul %3, %14, %cst_15 {dimension_numbers = #tpu.dot_dimension_numbers<[1], [0], [0], [1], [0, 0, 1, 1], [], []>} : vector<8x32xbf16>, vector<32x32xbf16>, vector<8x32xf32> -> vector<8x32xf32>
    %c2 = arith.constant 2 : index
    %c0_16 = arith.constant 0 : index
    %16 = vector.load %arg7[%c2, %c0_16] : memref<3x32xf32, #tpu.memory_space<vmem>>, vector<1x32xf32>
    %17 = vector.broadcast %16 : vector<1x32xf32> to vector<8x32xf32>
    %18 = arith.addf %15, %17 : vector<8x32xf32>
    %19 = vector.shape_cast %8 : vector<8x32xf32> to vector<1x8x32xf32>
    %20 = vector.shape_cast %13 : vector<8x32xf32> to vector<1x8x32xf32>
    %21 = vector.shape_cast %18 : vector<8x32xf32> to vector<1x8x32xf32>
    %22 = tpu.iota {dimensions = array<i32: 0>} : vector<8x32xi32>
    %23 = tpu.iota {dimensions = array<i32: 1>} : vector<8x32xi32>
    %c4_i32 = arith.constant 4 : i32
    %24 = vector.broadcast %c4_i32 : i32 to vector<8x32xi32>
    %25 = arith.muli %22, %24 : vector<8x32xi32>
    %26 = arith.cmpi sge, %23, %25 : vector<8x32xi32>
    %c4_i32_17 = arith.constant 4 : i32
    %27 = vector.broadcast %c4_i32_17 : i32 to vector<8x32xi32>
    %28 = arith.addi %25, %27 : vector<8x32xi32>
    %29 = arith.cmpi slt, %23, %28 : vector<8x32xi32>
    %30 = arith.andi %26, %29 : vector<8x32xi1>
    %cst_18 = arith.constant 1.000000e+00 : f32
    %cst_19 = arith.constant 0.000000e+00 : f32
    %31 = vector.broadcast %cst_18 : f32 to vector<8x32xf32>
    %32 = vector.broadcast %cst_19 : f32 to vector<8x32xf32>
    %33 = arith.select %30, %31, %32 : vector<8x32xi1>, vector<8x32xf32>
    %34 = vector.shape_cast %20 : vector<1x8x32xf32> to vector<1x1x8x32xf32>
    %35 = vector.shape_cast %33 : vector<8x32xf32> to vector<1x8x1x32xf32>
    %36 = vector.broadcast %34 : vector<1x1x8x32xf32> to vector<1x8x8x32xf32>
    %37 = vector.broadcast %35 : vector<1x8x1x32xf32> to vector<1x8x8x32xf32>
    %38 = arith.mulf %36, %37 : vector<1x8x8x32xf32>
    %39 = vector.shape_cast %38 : vector<1x8x8x32xf32> to vector<1x64x32xf32>
    %40 = vector.shape_cast %21 : vector<1x8x32xf32> to vector<1x1x8x32xf32>
    %41 = vector.shape_cast %33 : vector<8x32xf32> to vector<1x8x1x32xf32>
    %42 = vector.broadcast %40 : vector<1x1x8x32xf32> to vector<1x8x8x32xf32>
    %43 = vector.broadcast %41 : vector<1x8x1x32xf32> to vector<1x8x8x32xf32>
    %44 = arith.mulf %42, %43 : vector<1x8x8x32xf32>
    %45 = vector.shape_cast %44 : vector<1x8x8x32xf32> to vector<1x64x32xf32>
    "tpu.trace_start"() <{level = 10 : i32, message = "ntc,nmc->ntm"}> : () -> ()
    %cst_20 = arith.constant dense<0.000000e+00> : vector<1x8x64xf32>
    %46 = tpu.matmul %19, %39, %cst_20 {dimension_numbers = #tpu.dot_dimension_numbers<[2], [2], [1], [1], [0, 0, 0, 1, 1, 1], [0], [0]>} : vector<1x8x32xf32>, vector<1x64x32xf32>, vector<1x8x64xf32> -> vector<1x8x64xf32>
    "tpu.trace_stop"() : () -> ()
    %47 = vector.shape_cast %46 : vector<1x8x64xf32> to vector<1x8x8x8xf32>
    %cst_21 = arith.constant dense<0xFF800000> : vector<1x8x8xf32>
    %48 = vector.multi_reduction <maximumf>, %47, %cst_21 [3] : vector<1x8x8x8xf32> to vector<1x8x8xf32>
    %49 = vector.shape_cast %48 : vector<1x8x8xf32> to vector<1x8x8x1xf32>
    %50 = vector.broadcast %49 : vector<1x8x8x1xf32> to vector<1x8x8x8xf32>
    %51 = arith.subf %47, %50 : vector<1x8x8x8xf32>
    %52 = math.exp %51 : vector<1x8x8x8xf32>
    %cst_22 = arith.constant dense<0.000000e+00> : vector<1x8x8xf32>
    %53 = vector.multi_reduction <add>, %52, %cst_22 [3] : vector<1x8x8x8xf32> to vector<1x8x8xf32>
    %54 = vector.shape_cast %53 : vector<1x8x8xf32> to vector<1x8x8x1xf32>
    %55 = tpu.reciprocal %54 {approx = true} : vector<1x8x8x1xf32> -> vector<1x8x8x1xf32>
    %56 = vector.broadcast %55 : vector<1x8x8x1xf32> to vector<1x8x8x8xf32>
    %57 = arith.mulf %52, %56 : vector<1x8x8x8xf32>
    %58 = vector.shape_cast %57 : vector<1x8x8x8xf32> to vector<1x8x64xf32>
    "tpu.trace_start"() <{level = 10 : i32, message = "ntm,nmc->ntc"}> : () -> ()
    %cst_23 = arith.constant dense<0.000000e+00> : vector<1x8x32xf32>
    %59 = tpu.matmul %58, %45, %cst_23 {dimension_numbers = #tpu.dot_dimension_numbers<[2], [1], [1], [2], [0, 0, 0, 1, 1, 2], [0], [0]>} : vector<1x8x64xf32>, vector<1x64x32xf32>, vector<1x8x32xf32> -> vector<1x8x32xf32>
    "tpu.trace_stop"() : () -> ()
    %60 = vector.shape_cast %59 : vector<1x8x32xf32> to vector<8x32xf32>
    %61 = arith.truncf %60 : vector<8x32xf32> to vector<8x32xbf16>
    %c0_24 = arith.constant 0 : index
    %c0_25 = arith.constant 0 : index
    %62 = vector.load %arg6[%c0_24, %c0_25] : memref<32x128xbf16, #tpu.memory_space<vmem>>, vector<32x128xbf16>
    %cst_26 = arith.constant dense<0.000000e+00> : vector<8x128xf32>
    %63 = tpu.matmul %61, %62, %cst_26 {dimension_numbers = #tpu.dot_dimension_numbers<[1], [0], [0], [1], [0, 0, 1, 1], [], []>} : vector<8x32xbf16>, vector<32x128xbf16>, vector<8x128xf32> -> vector<8x128xf32>
    %c0_27 = arith.constant 0 : index
    %c0_28 = arith.constant 0 : index
    %64 = vector.load %arg8[%c0_27, %c0_28] : memref<1x128xf32, #tpu.memory_space<vmem>>, vector<1x128xf32>
    %65 = vector.broadcast %64 : vector<1x128xf32> to vector<8x128xf32>
    %66 = arith.addf %63, %65 : vector<8x128xf32>
    %67 = vector.shape_cast %66 : vector<8x128xf32> to vector<1x8x128xf32>
    %68 = arith.truncf %67 : vector<1x8x128xf32> to vector<1x8x128xbf16>
    %c0_29 = arith.constant 0 : index
    %c0_30 = arith.constant 0 : index
    %c0_31 = arith.constant 0 : index
    %69 = vector.load %arg9[%c0_29, %c0_30, %c0_31] : memref<1x8x128xbf16, #tpu.memory_space<vmem>>, vector<1x8x128xbf16>
    tpu.vector_store %arg9[%c0_29, %c0_30, %c0_31], %68 {strides = array<i32>} : memref<1x8x128xbf16, #tpu.memory_space<vmem>>, vector<1x8x128xbf16>,
    return
  }
  func.func @transform_0(%arg0: i32) -> (i32, i32, i32) {
    %c0_i32 = arith.constant 0 : i32
    %c0_i32_0 = arith.constant 0 : i32
    %c0_i32_1 = arith.constant 0 : i32
    return %arg0, %c0_i32, %c0_i32_0 : i32, i32, i32
  }
  func.func @transform_1(%arg0: i32) -> (i32, i32, i32) {
    %c0_i32 = arith.constant 0 : i32
    %c0_i32_0 = arith.constant 0 : i32
    %c0_i32_1 = arith.constant 0 : i32
    return %arg0, %c0_i32, %c0_i32_0 : i32, i32, i32
  }
  func.func @transform_2(%arg0: i32) -> (i32, i32) {
    %c0_i32 = arith.constant 0 : i32
    %c0_i32_0 = arith.constant 0 : i32
    %c0_i32_1 = arith.constant 0 : i32
    return %c0_i32, %c0_i32_0 : i32, i32
  }
  func.func @transform_3(%arg0: i32) -> (i32, i32) {
    %c0_i32 = arith.constant 0 : i32
    %c0_i32_0 = arith.constant 0 : i32
    %c0_i32_1 = arith.constant 0 : i32
    return %c0_i32, %c0_i32_0 : i32, i32
  }
  func.func @transform_4(%arg0: i32) -> (i32, i32) {
    %c0_i32 = arith.constant 0 : i32
    %c0_i32_0 = arith.constant 0 : i32
    %c0_i32_1 = arith.constant 0 : i32
    return %c0_i32, %c0_i32_0 : i32, i32
  }
  func.func @transform_5(%arg0: i32) -> (i32, i32) {
    %c0_i32 = arith.constant 0 : i32
    %c0_i32_0 = arith.constant 0 : i32
    %c0_i32_1 = arith.constant 0 : i32
    return %c0_i32, %c0_i32_0 : i32, i32
  }
  func.func @transform_6(%arg0: i32) -> (i32, i32) {
    %c0_i32 = arith.constant 0 : i32
    %c0_i32_0 = arith.constant 0 : i32
    %c0_i32_1 = arith.constant 0 : i32
    return %c0_i32, %c0_i32_0 : i32, i32
  }
  func.func @transform_7(%arg0: i32) -> (i32, i32) {
    %c0_i32 = arith.constant 0 : i32
    %c0_i32_0 = arith.constant 0 : i32
    %c0_i32_1 = arith.constant 0 : i32
    return %c0_i32, %c0_i32_0 : i32, i32
  }
  func.func @transform_8(%arg0: i32) -> (i32, i32, i32) {
    %c0_i32 = arith.constant 0 : i32
    %c0_i32_0 = arith.constant 0 : i32
    %c0_i32_1 = arith.constant 0 : i32
    return %arg0, %c0_i32, %c0_i32_0 : i32, i32, i32
  }
}

</mosaic_0001>

<bundles_post_ra>
// kernel: tpu_custom_call.1
= control target key start
LH: loop header
LB: loop body
LE: loop exit
PB: predicated region body
PF: predicated region fallthrough
CT: control target
= control target key end

     0   :  { %s2623_s0 = inlined_call_operand.hbm [shape: bf16[2,8,32], index: 0, kind: input, shape index: {}]   ;;  %s2624_s1 = inlined_call_operand.hbm [shape: bf16[2,8,32], index: 1, kind: input, shape index: {}]   ;;  %s2625_s2 = inlined_call_operand.hbm [shape: bf16[32,32], index: 2, kind: input, shape index: {}]   ;;  %s2626_s3 = inlined_call_operand.hbm [shape: bf16[32,32], index: 3, kind: input, shape index: {}]   ;;  %s2627_s4 = inlined_call_operand.hbm [shape: bf16[32,32], index: 4, kind: input, shape index: {}]   ;;  %s2628_s5 = inlined_call_operand.vmem [shape: bf16[32,128], index: 5, kind: input, shape index: {}]   ;;  %s2629_s6 = inlined_call_operand.vmem [shape: f32[3,32], index: 6, kind: input, shape index: {}]   ;;  %s2630_s7 = inlined_call_operand.vmem [shape: f32[1,128], index: 7, kind: input, shape index: {}]   ;;  %s2631_s8 = inlined_call_operand.hbm [shape: bf16[2,8,128], index: 8, kind: output, shape index: {}]  }
   0x1   :  { %2638 = sst [smem:[#allocation19_spill]] %s2625_s2 }
   0x2   :  { %2639 = sst [smem:[#allocation20_spill]] %s2626_s3 }
   0x3   :  { %2640 = sst [smem:[#allocation21_spill]] %s2627_s4 }
   0x4   :  { %13 = vsyncpa [#allocation3], 0 }
   0x5   :  { %15 = vsyncpa [#allocation3 + $0x1], 0 }
   0x6   :  { %16 = vsyncpa [#allocation6], 0 }
   0x7   :  { %18 = vsyncpa [#allocation6 + $0x1], 0 }
   0x8   :  { %19 = vsyncpa [#allocation9], 0 }
   0x9   :  { %20 = vsyncpa [#allocation4], 0 }
   0xa   :  { %22 = vsyncpa [#allocation4 + $0x1], 0  ;;  %s2124_s27 = smov 0   ;;  %s2126_s28 = smov 0  }
   0xb   :  { %s2128_s29 = smov 0   ;;  %s2130_s30 = smov 0  }
   0xc LB: > { %2641 = sst [smem:[#allocation17_spill]] %s2037_s27  ;;  %s2145_s9 = sadd.s32 4294967295, %s2049_s30   ;;  %s2049_s30 = sphi %s2130_s30, %s2670_s30   ;;  %s2045_s29 = sphi %s2128_s29, %s2669_s29   ;;  %s2041_s28 = sphi %s2126_s28, %s2668_s28   ;;  %s2037_s27 = sphi %s2124_s27, %s2667_s27  }
   0xd   : > { %s1508_s10 = sadd.s32 4294967294, %s2049_s30   ;;  %p48_p0 = scmp.ne.s32.totalorder %s2041_s28, %s2037_s27 }
   0xe   : > { %p2632_p1 = scmp.eq.s32.totalorder %s2145_s9, 0  ;;  %p230_p3 = scmp.eq.s32.totalorder %s1508_s10, 1 }
   0xf   : > { %p1509_p5 = scmp.ge.s32.totalorder %s2049_s30, 1  ;;  %p237_p7 = scmp.lt.s32.totalorder %s2049_s30, 3 }
  0x10   : > { %p2154_p4 = por %p2632_p1, %p48_p0  ;;  %p2159_p6 = por %p230_p3, %p48_p0 }
  0x11   : > { %p2164_p8 = pnand %p1509_p5, %p237_p7  ;;  %s2051_s14 = smov [#allocation7]  }
  0x12   : > { %s2642_s11 = scalar_select %p2154_p4, 1, 0 }
  0x13   : > { %s2643_s12 = scalar_select %p2159_p6, 1, 0 }
  0x14   : > { %s2645_s13 = scalar_select %p2164_p8, 1, 0 }
  0x15   : > { %2644 = sst [smem:[#allocation18_spill]] %s2643_s12  ;;  %s249_s15 = sshll.u32 %s2051_s14, 4  ;;  %s2168_s15 = int_to_ptr.vmem [resolvable:$true] %s249_s15 }
  0x16   : > { %p1701_p9 = pneg %p2164_p8  ;;  %s2052_s17 = smov [#allocation8]  }
  0x17   : > { %s262_s18 = sshll.u32 %s2052_s17, 4  ;;  %s2053_s19 = smov [#allocation10]   ;;  %s2179_s18 = int_to_ptr.vmem [resolvable:$true] %s262_s18 }
  0x18   : > { %p2175_p11 = pnand %p1701_p9, %p2632_p1  ;;  %s2181_s20 = sshll.u32 %s2053_s19, 4  ;;  %s276_s20 = int_to_ptr.vmem [resolvable:$true] %s2181_s20 }
  0x19   : > { %s2647_s2 = sld [smem:[#allocation19_spill]] }
  0x1a   : > { %p2191_p13 = pneg %p2175_p11 }
  0x1f   : > { %s1827_s23 = scalar_lea.hbm %s2647_s2, 256 }
  0x20   : > { %p1828_p12 = scmp.ne.s32.totalorder %s2647_s2, %s1827_s23  ;;  %p1834_p5 = scmp.lt.u32.totalorder %s1827_s23, %s2647_s2 }
  0x22   : > { %p1830_p0 = pnand %p2191_p13, %p1828_p12 }
  0x24   : > { %p1831_p3 = pneg %p1830_p0 }
  0x26   : > { %p1836_p7 = pnand %p1834_p5, %p1831_p3 }
  0x28   : > { %1839 = shalt.err (!%p1836_p7)
}
  0x29   : > { %s1840_s17 = scalar_lea.vmem %s2168_s15, 256  ;;  %p1848_p2 = scmp.lt.s32.totalorder %s2168_s15, %s2168_s15 }
  0x2a   : > { %p1841_p9 = scmp.ne.s32.totalorder %s2168_s15, %s1840_s17  ;;  %p1849_p6 = scmp.lt.s32.totalorder %s1840_s17, %s1840_s17 }
  0x2c   : > { %p1843_p10 = pnand %p1841_p9, %p2191_p13  ;;  %p1850_p12 = por %p1849_p6, %p1848_p2 }
  0x2e   : > { %p1844_p1 = pneg %p1843_p10 }
  0x30   : > { %p1851_p0 = pnand %p1850_p12, %p1844_p1 }
  0x32   : > { %1854 = shalt.err (!%p1851_p0)
}
  0x33   : > { %s2054_s19 = smov 64   ;;  %s2055_s21 = smov 4  }
  0x34   : > { %1704 = dma.hbm_to_vmem [thread:$0]  (!%p2175_p11), %s2647_s2, 256, %s2168_s15, [#allocation6], %s2054_s19, %s2054_s19, %s2055_s21  }
  0x35   : > { %s2649_s3 = sld [smem:[#allocation20_spill]] }
  0x3b   : > { %s1855_s10 = scalar_lea.hbm %s2649_s3, 256 }
  0x3c   : > { %p1856_p1 = scmp.ne.s32.totalorder %s2649_s3, %s1855_s10  ;;  %p1862_p10 = scmp.lt.u32.totalorder %s1855_s10, %s2649_s3 }
  0x3e   : > { %p1858_p2 = pnand %p1856_p1, %p2191_p13 }
  0x40   : > { %p1859_p6 = pneg %p1858_p2 }
  0x42   : > { %p1864_p3 = pnand %p1862_p10, %p1859_p6 }
  0x44   : > { %1867 = shalt.err (!%p1864_p3)
}
  0x45   : > { %s1868_s15 = scalar_lea.vmem %s2179_s18, 256  ;;  %p1876_p12 = scmp.lt.s32.totalorder %s2179_s18, %s2179_s18 }
  0x46   : > { %p1869_p5 = scmp.ne.s32.totalorder %s2179_s18, %s1868_s15  ;;  %p1877_p0 = scmp.lt.s32.totalorder %s1868_s15, %s1868_s15 }
  0x48   : > { %p1871_p7 = pnand %p1869_p5, %p2191_p13  ;;  %p1878_p1 = por %p1877_p0, %p1876_p12 }
  0x4a   : > { %p1872_p9 = pneg %p1871_p7 }
  0x4c   : > { %p1879_p2 = pnand %p1878_p1, %p1872_p9 }
  0x4e   : > { %1882 = shalt.err (!%p1879_p2)
}
  0x4f   : > { %1707 = dma.hbm_to_vmem [thread:$0]  (!%p2175_p11), %s2649_s3, 256, %s2179_s18, [#allocation9], %s2054_s19, %s2054_s19, %s2055_s21  }
  0x50   : > { %s2650_s4 = sld [smem:[#allocation21_spill]] }
  0x56   : > { %s1883_s24 = scalar_lea.hbm %s2650_s4, 256 }
  0x57   : > { %p1884_p6 = scmp.ne.s32.totalorder %s2650_s4, %s1883_s24  ;;  %p1890_p5 = scmp.lt.u32.totalorder %s1883_s24, %s2650_s4 }
  0x59   : > { %p1886_p10 = pnand %p1884_p6, %p2191_p13 }
  0x5b   : > { %p1887_p3 = pneg %p1886_p10 }
  0x5d   : > { %p1892_p7 = pnand %p1890_p5, %p1887_p3 }
  0x5f   : > { %1895 = shalt.err (!%p1892_p7)
}
  0x60   : > { %s1896_s15 = scalar_lea.vmem %s276_s20, 256  ;;  %p1904_p1 = scmp.lt.s32.totalorder %s276_s20, %s276_s20 }
  0x61   : > { %p1897_p9 = scmp.ne.s32.totalorder %s276_s20, %s1896_s15  ;;  %p1905_p2 = scmp.lt.s32.totalorder %s1896_s15, %s1896_s15 }
  0x63   : > { %p1899_p12 = pnand %p1897_p9, %p2191_p13  ;;  %p1906_p4 = por %p1905_p2, %p1904_p1 }
  0x65   : > { %p1900_p0 = pneg %p1899_p12 }
  0x67   : > { %p1907_p8 = pnand %p1906_p4, %p1900_p0 }
  0x69   : > { %1910 = shalt.err (!%p1907_p8)
}
  0x6a   : > { %1710 = dma.hbm_to_vmem [thread:$0]  (!%p2175_p11), %s2650_s4, 256, %s276_s20, [#allocation9], %s2054_s19, %s2054_s19, %s2055_s21  }
  0x6b   : > { %s2264_s26 = sadd.s32 1, %s2049_s30   ;;  %s35_s12 = sadd.s32 1, %s2045_s29 }
  0x6c   : > { %s32_s16 = ssub.s32 %s2049_s30, %s2264_s26  ;;  %p42_p8 = scmp.ne.s32.totalorder %s2045_s29, %s2041_s28 }
  0x6d   : > { %p33_p4 = scmp.eq.s32.totalorder %s32_s16, 0  ;;  %p43_p13 = scmp.eq.s32.totalorder %s2049_s30, 0 }
  0x6e   : > { %p1725_p6 = scmp.lt.s32.totalorder %s2049_s30, 2  ;;  %p2651_p3 = scmp.eq.s32.totalorder %s2145_s9, 1 }
  0x6f   : > { %s2274_s22 = scalar_select %p33_p4, %s2045_s29, %s35_s12  }
  0x70   : > { %p44_p10 = por %p43_p13, %p42_p8  ;;  %p2278_p5 = por %p2651_p3, %p42_p8 }
  0x71   : > { %s298_s24 = sand.u32 1, %s2045_s29   ;;  %s1515_s25 = sshll.u32 %s2049_s30, 6 }
  0x72   : > { %s2652_s23 = scalar_select %p2278_p5, 1, 0 }
  0x73   : > { %s2284_s20 = sshll.u32 %s298_s24, 2  ;;  %s2289_s10 = scalar_lea.hbm %s2623_s0, %s1515_s25 }
  0x74   : > { %s302_s14 = scalar_lea.vmem [#allocation2], %s2284_s20  ;;  %p2292_p11 = pnand %p1725_p6, %p44_p10 }
  0x75   : > { %s309_s17 = sshll.u32 %s302_s14, 4  ;;  %s2301_s16 = scalar_lea.hbm %s2624_s1, %s1515_s25  ;;  %s2296_s17 = int_to_ptr.vmem [resolvable:$true] %s309_s17 }
  0x76   : > { %s299_s12 = scalar_lea.sflag [#allocation3], %s298_s24  ;;  %s1911_s19 = scalar_lea.hbm %s2289_s10, 64 }
  0x77   : > { %p1912_p7 = scmp.ne.s32.totalorder %s2289_s10, %s1911_s19  ;;  %p1913_p9 = pneg %p2292_p11 }
  0x78   : > { %s1916_s2 = scalar_lea.hbm %s2623_s0, 128  ;;  %p1917_p1 = scmp.lt.u32.totalorder %s2289_s10, %s2623_s0 }
  0x79   : > { %p1914_p12 = pnand %p1913_p9, %p1912_p7  ;;  %p1918_p2 = scmp.lt.u32.totalorder %s1916_s2, %s1911_s19 }
  0x7a   : > { %p1920_p8 = scmp.lt.u32.totalorder %s1911_s19, %s2289_s10 }
  0x7b   : > { %p1915_p0 = pneg %p1914_p12  ;;  %p1919_p4 = por %p1918_p2, %p1917_p1 }
  0x7d   : > { %p1921_p13 = por %p1920_p8, %p1919_p4 }
  0x7f   : > { %p1922_p6 = pnand %p1921_p13, %p1915_p0 }
  0x81   : > { %1925 = shalt.err (!%p1922_p6)
}
  0x82   : > { %s1926_s24 = scalar_lea.vmem %s2296_s17, 64  ;;  %s2056_s25 = smov [#allocation2]  }
  0x83   : > { %p1927_p10 = scmp.ne.s32.totalorder %s2296_s17, %s1926_s24  ;;  %s1931_s18 = sshll.u32 %s2056_s25, 4  ;;  %s1932_s18 = int_to_ptr.vmem [resolvable:$false] %s1931_s18 }
  0x84   : > { %s1933_s3 = scalar_lea.vmem %s1932_s18, 128  ;;  %p1934_p12 = scmp.lt.s32.totalorder %s2296_s17, %s1932_s18 }
  0x85   : > { %p1929_p3 = pnand %p1927_p10, %p1913_p9  ;;  %p1935_p1 = scmp.lt.s32.totalorder %s1933_s3, %s1926_s24 }
  0x87   : > { %p1930_p7 = pneg %p1929_p3  ;;  %p1936_p2 = por %p1935_p1, %p1934_p12 }
  0x89   : > { %p1937_p4 = pnand %p1936_p2, %p1930_p7 }
  0x8b   : > { %1940 = shalt.err (!%p1937_p4)
}
  0x8c   : > { %1714 = dma.hbm_to_vmem [thread:$0]  (!%p2292_p11), %s2289_s10, 64, %s2296_s17, %s299_s12  }
  0x8d   : > { %s316_s2 = sand.u32 1, %s2049_s30   ;;  %s320_s4 = scalar_lea.vmem [#allocation5], %s2284_s20 }
  0x8e   : > { %s327_s27 = sshll.u32 %s320_s4, 4  ;;  %s317_s19 = scalar_lea.sflag [#allocation6], %s316_s2  ;;  %s328_s27 = int_to_ptr.vmem [resolvable:$true] %s327_s27 }
  0x8f   : > { %s1941_s21 = scalar_lea.hbm %s2301_s16, 64  ;;  %s1946_s25 = scalar_lea.hbm %s2624_s1, 128 }
  0x90   : > { %p1942_p0 = scmp.ne.s32.totalorder %s2301_s16, %s1941_s21  ;;  %p1947_p6 = scmp.lt.u32.totalorder %s2301_s16, %s2624_s1 }
  0x91   : > { %p1948_p10 = scmp.lt.u32.totalorder %s1946_s25, %s1941_s21  ;;  %p1950_p7 = scmp.lt.u32.totalorder %s1941_s21, %s2301_s16 }
  0x92   : > { %p1944_p8 = pnand %p1942_p0, %p1913_p9 }
  0x93   : > { %p1949_p3 = por %p1948_p10, %p1947_p6 }
  0x94   : > { %p1945_p13 = pneg %p1944_p8 }
  0x95   : > { %p1951_p12 = por %p1950_p7, %p1949_p3 }
  0x97   : > { %p1952_p1 = pnand %p1951_p12, %p1945_p13 }
  0x99   : > { %1955 = shalt.err (!%p1952_p1)
}
  0x9a   : > { %s1956_s20 = scalar_lea.vmem %s328_s27, 64  ;;  %s2057_s10 = smov [#allocation5]  }
  0x9b   : > { %p1957_p2 = scmp.ne.s32.totalorder %s328_s27, %s1956_s20  ;;  %s1961_s17 = sshll.u32 %s2057_s10, 4  ;;  %s1962_s17 = int_to_ptr.vmem [resolvable:$false] %s1961_s17 }
  0x9c   : > { %s1963_s12 = scalar_lea.vmem %s1962_s17, 128  ;;  %p1964_p8 = scmp.lt.s32.totalorder %s328_s27, %s1962_s17 }
  0x9d   : > { %p1959_p4 = pnand %p1957_p2, %p1913_p9  ;;  %p1965_p5 = scmp.lt.s32.totalorder %s1963_s12, %s1956_s20 }
  0x9f   : > { %p1960_p0 = pneg %p1959_p4  ;;  %p1966_p6 = por %p1965_p5, %p1964_p8 }
  0xa1   : > { %p1967_p10 = pnand %p1966_p6, %p1960_p0 }
  0xa3   : > { %1970 = shalt.err (!%p1967_p10)
}
  0xa4   : > { %1717 = dma.hbm_to_vmem [thread:$0]  (!%p2292_p11), %s2301_s16, 64, %s328_s27, %s317_s19  }
  0xa5   : > { %p2654_p13 = scmp.ne.s32.totalorder %s2645_s13, 0 }
  0xa6   : > { %s2352_s2 = sand.u32 (!%p2654_p13), 1, %s2041_s28   ;;  %p2655_p5 = scmp.ne.s32.totalorder (!%p2654_p13), %s2642_s11, 0 }
  0xa7   : > { %336 = sbr.rel (%p2654_p13) target bundleno = 1703 (0x6a7), region = 52  ;;  %s2355_s4 = sshll.u32 (!%p2654_p13), %s2352_s2, 2 }
  0xa8   : > { %s339_s21 = scalar_lea.sflag (!%p2654_p13), [#allocation3], %s2352_s2  ;;  %s342_s14 = scalar_lea.vmem (!%p2654_p13), [#allocation2], %s2355_s4 }
  0xae   : > { %2016 = dma.done.wait (%p2655_p5), %s339_s21, 64  }
  0xaf   : > { %2018 = vsyncadd (%p2655_p5), %s339_s21, 4294967232  ;;  %s347_s13 = sand.u32 1, %s2145_s9   ;;  %s351_s16 = scalar_lea.vmem [#allocation5], %s2355_s4 }
  0xb0   : > { %s348_s15 = scalar_lea.sflag [#allocation6], %s347_s13 }
  0xb1   : > { %2020 = dma.done.wait (%p2655_p5), %s348_s15, 64  }
  0xb2   : > { %2022 = vsyncadd (%p2655_p5), %s348_s15, 4294967232  ;;  %p2656_p11 = scmp.eq.s32.totalorder %s2145_s9, 0 }
  0xb4   : > { %2024 = dma.done.wait (%p2656_p11), [#allocation6], 256   ;;  %p2657_p9 = pmov %p2656_p11 }
  0xb6   : > { %2026 = vsyncadd (%p2657_p9), [#allocation6], 4294967040  ;;  %p2658_p3 = pmov %p2657_p9 }
  0xb8   : > { %2028 = dma.done.wait (%p2658_p3), [#allocation9], 512   ;;  %p2659_p7 = pmov %p2658_p3 }
  0xb9   : > { %v2058_v0 = vmov 0.0   ;;  %vm2059_vm0 = vmmov 0   ;;  %v1787_v1 = vld [vmem:[#allocation8] sm:$0xff]   ;;  %v1788_v2 = vld [vmem:[#allocation8 + $0x8] sm:$0xff]   ;;  %v1789_v3 = vld [vmem:[#allocation7] sm:$0xff]   ;;  %vm425_vm1 = vcmask 261120   ;;  %v594_v8 = vlaneseq }
  0xba   : > { %2030 = vsyncadd (%p2659_p7), [#allocation9], 4294966784  ;;  %1593 = vmatprep.subr.bf16.mxu1 %v2058_v0  ;;  %1597 = vmatprep.mubr.msk.bf16.mxu1 %vm2059_vm0, %v2058_v0  ;;  %v2384_v4 = vld [vmem:[%s351_s16] sm:$0xf]  ;;  %v1790_v5 = vld [vmem:[#allocation7 + $0x8] sm:$0xff]   ;;  %v2060_v7 = vmov 0.0|0.0  }
  0xbb   : > { %1585 = vmatprep.subr.bf16.mxu0 %v2058_v0  ;;  %1589 = vmatprep.mubr.msk.bf16.mxu0 %vm2059_vm0, %v2058_v0  ;;  %v402_v6 = vld [vmem:[%s342_s14] sm:$0xf]  ;;  %v2398_v9 = vshrl.u32 %v594_v8, 7  ;;  %v2061_v11 = vmov 1966171168   ;;  %v597_v13 = vand.u32 127, %v594_v8  ;;  %vm2415_vm5 = vmpackc.low %vm425_vm1, %vm425_vm1 }
  0xbc   : > { %1594 = vmatpush3.bf16.msra.mxu1 %v1787_v1  ;;  %1586 = vmatpush3.bf16.msra.mxu0 %v1789_v3  ;;  %v607_v12 = vunpack.c.l.s4 %v2061_v11  ;;  %v1529_v23 = vld [vmem:[%s2629_s6 + $0x1] ss:$0 sm:$0xff]  ;;  %v1525_v63 = vld [vmem:[%s2629_s6] ss:$0 sm:$0xff]  ;;  %s2062_s25 = smov 104   ;;  %s2063_s18 = smov 120  }
  0xbd   : > { %1595 = vmatprep.subr.bf16.mxu1 %v2058_v0  ;;  %1587 = vmatprep.subr.bf16.mxu0 %v2058_v0  ;;  %v598_v10 = vmul.u32 4, %v2398_v9  ;;  %v656_v20 = vsub.s32 0, %v2398_v9  ;;  %s2064_s3 = smov 96   ;;  %s2065_s20 = smov 112   ;;  %v2069_v8 = vmov 1983009808  }
  0xbe   : > { %v608_v15 = vunpack.c.0.s8 %v607_v12  ;;  %s2066_s10 = smov 80   ;;  %s2067_s17 = smov 88   ;;  %vm965_vm6 = vcmask 64512   ;;  %vm1219_vm7 = vcmask 130048   ;;  %vm1221_vm8 = vcmask 195584  }
  0xbf   : > { %v600_v14 = vadd.s32 4, %v598_v10  ;;  %vm599_vm2 = vcmp.ge.s32.totalorder %v597_v13, %v598_v10  ;;  %s2068_s12 = smov 72   ;;  %v832_v10 = vunpack.c.l.s4 %v2069_v8  ;;  %s2071_s13 = smov 16   ;;  %vm1224_vm9 = vcmask 326656  }
  0xc0   : > { %1596 = vmatpush3.bf16.msra.mxu1 %v1788_v2  ;;  %1588 = vmatpush3.bf16.msra.mxu0 %v1790_v5  ;;  %v611_v16 = vsub.s32 %v608_v15, %v2398_v9  ;;  %s2072_s15 = smov 8   ;;  %s2073_s16 = smov 24   ;;  %vm1226_vm10 = vcmask 392192   ;;  %vm1228_vm11 = vcmask 457728   ;;  %vm1230_vm12 = vcmask 523264  }
  0xc1   : > { %1601 = vmatprep.subr.bf16.mxu0 %v2058_v0  ;;  %1655 = vmatprep.subr.bf16.mxu1 %v2060_v7  ;;  %vm601_vm3 = vcmp.lt.s32.totalorder %v597_v13, %v600_v14  ;;  %v833_v13 = vunpack.c.0.s8 %v832_v10  ;;  %v2070_v14 = vmov 1934713408   ;;  %s2074_s11 = smov 32   ;;  %s2075_s27 = smov 40  }
  0xc2   : > { %vm602_vm4 = vmand %vm599_vm2, %vm601_vm3  ;;  %v896_v15 = vunpack.c.l.s4 %v2070_v14  ;;  %s2076_s19 = smov 48   ;;  %s2077_s24 = smov 56  }
  0xc3   : > { %1598 = vmatmul.mubr.msk.bf16.vlgmr.msra.gmra.mrb[0].mxu1 %vm425_vm1, %v2384_v4  ;;  %1590 = vmatmul.mubr.msk.bf16.vlgmr.msra.gmra.mrb[0].mxu0 %vm425_vm1, %v402_v6  ;;  %v603_v17 = vsel %vm602_vm4, 1.0, %v2058_v0  ;;  %s400_s21 = scalar_lea.vmem [#allocation11], %s2355_s4  ;;  %p2662_p1 = scmp.ne.s32.totalorder %s2652_s23, 0 }
  0xc4   : > { %1625 = vmatprep.mubr.msk.f32.mxu1 %vm2059_vm0, %v2058_v0  ;;  %1605 = vmatprep.mubr.msk.bf16.mxu0 %vm2059_vm0, %v2058_v0  ;;  %v612_v18 = vrot.slane %v603_v17, %v611_v16  ;;  %v605_v26 = vcombine.high %v603_v17, %v603_v17  ;;  %s1387_s14 = sshll.u32 %s400_s21, 4  ;;  %s2078_s4 = smov [#allocation11]   ;;  %s2581_s14 = int_to_ptr.vmem [resolvable:$true] %s1387_s14 }
  0xc6   : > { %v620_v19 = vcombine.high %v612_v18, %v612_v18  ;;  %v628_v21 = vrot.slane %v612_v18, %v611_v16  ;;  %v619_v36 = vrot.slane %v605_v26, %v611_v16 }
  0xc8   : > { %v642_v22 = vrot.slane %v620_v19, %v611_v16  ;;  %v2407_v24 = vrot.slane %v628_v21, %v656_v20  ;;  %v650_v30 = vcombine.high %v628_v21, %v628_v21  ;;  %v621_v45 = vcombine.high %v619_v36, %v619_v36 }
  0xc9   : > { %v635_v48 = vrot.slane %v619_v36, %v611_v16  ;;  %v2453_v19 = vsub.s32 %v833_v13, %v2398_v9  ;;  %v897_v21 = vunpack.c.0.s8 %v896_v15 }
  0xca   : > { %v2409_v25 = vrot.slane %v642_v22, %v656_v20  ;;  %v652_v31 = vcombine.high %v642_v22, %v642_v22  ;;  %v2419_v41 = vrot.slane %v650_v30, %v656_v20  ;;  %v649_v49 = vrot.slane %v621_v45, %v611_v16 }
  0xcb   : > { %v2428_v51 = vrot.slane %v635_v48, %v656_v20  ;;  %v651_v55 = vcombine.high %v635_v48, %v635_v48 }
  0xcc   : > { %v2421_v42 = vrot.slane %v652_v31, %v656_v20  ;;  %v2430_v52 = vrot.slane %v649_v49, %v656_v20  ;;  %v653_v56 = vcombine.high %v649_v49, %v649_v49 }
  0xcd   : > { %v2437_v58 = vrot.slane %v651_v55, %v656_v20 }
  0xce   : > { %v2439_v59 = vrot.slane %v653_v56, %v656_v20 }
 0x196   : > { %v527_v27 = vpop.f32.mrb[0].mxu1  ;;  %v463_v37 = vpop.f32.mrb[0].mxu0 }
 0x197   : > { %v528_v28 = vadd.f32 %v1529_v23, %v527_v27  ;;  %v1599_v29 = vpop.f32.mrb[1].mxu1  ;;  %v1591_v39 = vpop.f32.mrb[1].mxu0  ;;  %v464_v1 = vadd.f32 %v1525_v63, %v463_v37 }
 0x198   : > { %v530_v32 = vpop.f32.mrb[2].mxu1  ;;  %v466_v43 = vpop.f32.mrb[2].mxu0 }
 0x199   : > { %v1600_v33 = vpop.f32.mrb[3].mxu1  ;;  %v694_v34 = vmul.f32 %v2407_v24, %v528_v28  ;;  %v695_v35 = vmul.f32 %v2409_v25, %v528_v28  ;;  %v1592_v44 = vpop.f32.mrb[3].mxu0  ;;  %v696_v46 = vmul.f32 %v2419_v41, %v528_v28  ;;  %v697_v47 = vmul.f32 %v2421_v42, %v528_v28 }
 0x19a   : > { %v698_v53 = vmul.f32 %v2428_v51, %v528_v28  ;;  %v699_v54 = vmul.f32 %v2430_v52, %v528_v28  ;;  %v700_v60 = vmul.f32 %v2437_v58, %v528_v28  ;;  %v701_v61 = vmul.f32 %v2439_v59, %v528_v28 }
 0x19b   : > { %v1656_v40 = vpack.c.bf16 %v695_v35, %v694_v34  ;;  %v1660_v50 = vpack.c.bf16 %v697_v47, %v696_v46  ;;  %v2458_v32 = vsub.s32 %v897_v21, %v2398_v9 }
 0x19c   : > { %v1664_v57 = vpack.c.bf16 %v699_v54, %v698_v53  ;;  %v1668_v62 = vpack.c.bf16 %v701_v61, %v700_v60 }
 0x19d   : > { %1658 = vmatpush3.bf16.xpose.msk.msra.mxu1 %vm2415_vm5, %v1656_v40 }
 0x19e   : > { %1659 = vmatprep.subr.bf16.mxu1 %v2060_v7 }
 0x1a5   : > { %1662 = vmatpush3.bf16.xpose.msk.msra.mxu1 %vm2415_vm5, %v1660_v50 }
 0x1a6   : > { %1663 = vmatprep.subr.bf16.mxu1 %v2060_v7 }
 0x1ad   : > { %1666 = vmatpush3.bf16.xpose.msk.msra.mxu1 %vm2415_vm5, %v1664_v57 }
 0x1ae   : > { %1667 = vmatprep.subr.bf16.mxu1 %v2060_v7 }
 0x1b5   : > { %1670 = vmatpush3.bf16.xpose.msk.msra.mxu1 %vm2415_vm5, %v1668_v62 }
 0x1bc   : > { %1626 = vmatmul.mubr.msk.f32.vlgmr.msra.gmra.mrb[4].mxu1 %vm425_vm1, %v464_v1 }
 0x28f   : > { %v803_v2 = vpop.f32.mrb[4].mxu1 }
 0x290   : > { %814 = vrot.lane.b32.xlu1 %v803_v2, %s2062_s25  ;;  %808 = vrot.lane.b32.xlu0 %v803_v2, %s2063_s18  ;;  %v1627_v3 = vpop.f32.mrb[5].mxu1 }
 0x294   : > { %817 = vrot.lane.b32.xlu1 %v803_v2, %s2064_s3  ;;  %811 = vrot.lane.b32.xlu0 %v803_v2, %s2065_s20 }
 0x298   : > { %823 = vrot.lane.b32.xlu1 %v803_v2, %s2066_s10  ;;  %820 = vrot.lane.b32.xlu0 %v803_v2, %s2067_s17 }
 0x29c   : > { %826 = vrot.lane.b32.xlu0 %v803_v2, %s2068_s12  ;;  %s1552_s12 = sshll.u32 %s2145_s9, 6  ;;  %s1971_s9 = scalar_lea.vmem %s2581_s14, 64 }
 0x29d   : > { %p1972_p12 = scmp.ne.s32.totalorder %s2581_s14, %s1971_s9 }
 0x29f   : > { %p1973_p2 = pnand %p1972_p12, %p2662_p1 }
 0x2a1   : > { %p1974_p4 = pneg %p1973_p2 }
 0x302   : > { %v815_v5 = vpop.permute.xlu1 %814  ;;  %v809_v6 = vpop.permute.xlu0 %808 }
 0x303   : > { %v845_v20 = vcombine.low %v809_v6, %v815_v5  ;;  %v846_v33 = vcombine.high %v809_v6, %v815_v5 }
 0x305   : > { %v853_v28 = vrot.slane %v845_v20, %v2453_v19  ;;  %v860_v46 = vrot.slane %v846_v33, %v2453_v19 }
 0x306   : > { %v818_v11 = vpop.permute.xlu1 %817  ;;  %v812_v12 = vpop.permute.xlu0 %811 }
 0x307   : > { %v829_v16 = vcombine.low %v803_v2, %v812_v12  ;;  %v830_v29 = vcombine.high %v803_v2, %v812_v12 }
 0x309   : > { %v837_v22 = vrot.slane %v829_v16, %v2453_v19  ;;  %v844_v39 = vrot.slane %v830_v29, %v2453_v19 }
 0x30a   : > { %v824_v17 = vpop.permute.xlu1 %823  ;;  %v821_v18 = vpop.permute.xlu0 %820 }
 0x30b   : > { %v861_v23 = vcombine.low %v818_v11, %v824_v17  ;;  %v862_v26 = vcombine.high %v818_v11, %v824_v17  ;;  %v893_v34 = vcombine.low %v837_v22, %v853_v28  ;;  %v894_v40 = vcombine.high %v837_v22, %v853_v28  ;;  %v1791_v17 = vld [vmem:[#allocation10] sm:$0xff]  }
 0x30c   : > { %v909_v49 = vcombine.low %v844_v39, %v860_v46  ;;  %v910_v63 = vcombine.high %v844_v39, %v860_v46  ;;  %1602 = vmatpush3.bf16.msra.mxu0 %v1791_v17 }
 0x30d   : > { %v869_v35 = vrot.slane %v861_v23, %v2453_v19  ;;  %v876_v38 = vrot.slane %v862_v26, %v2453_v19  ;;  %v901_v9 = vrot.slane %v893_v34, %v2458_v32  ;;  %v908_v54 = vrot.slane %v894_v40, %v2458_v32  ;;  %1603 = vmatprep.subr.bf16.mxu0 %v2058_v0 }
 0x30e   : > { %v827_v27 = vpop.permute.xlu0 %826  ;;  %v917_v1 = vrot.slane %v909_v49, %v2458_v32  ;;  %v924_v10 = vrot.slane %v910_v63, %v2458_v32 }
 0x30f   : > { %v877_v30 = vcombine.low %v821_v18, %v827_v27  ;;  %v878_v31 = vcombine.high %v821_v18, %v827_v27  ;;  %v1792_v18 = vld [vmem:[#allocation10 + $0x8] sm:$0xff]  }
 0x310   : > { %1604 = vmatpush3.bf16.msra.mxu0 %v1792_v18 }
 0x311   : > { %v885_v36 = vrot.slane %v877_v30, %v2453_v19  ;;  %v892_v37 = vrot.slane %v878_v31, %v2453_v19  ;;  %1671 = vmatprep.subr.bf16.mxu0 %v2060_v7 }
 0x313   : > { %v925_v43 = vcombine.low %v869_v35, %v885_v36  ;;  %v926_v44 = vcombine.high %v869_v35, %v885_v36  ;;  %v941_v45 = vcombine.low %v876_v38, %v892_v37  ;;  %v942_v55 = vcombine.high %v876_v38, %v892_v37  ;;  %1606 = vmatmul.mubr.msk.bf16.vlgmr.msra.gmra.mrb[4].mxu0 %vm425_vm1, %v2384_v4 }
 0x314   : > { %1644 = vmatprep.mubr.msk.f32.mxu0 %vm2059_vm0, %v2058_v0 }
 0x315   : > { %v933_v47 = vrot.slane %v925_v43, %v2458_v32  ;;  %v940_v48 = vrot.slane %v926_v44, %v2458_v32  ;;  %v949_v56 = vrot.slane %v941_v45, %v2458_v32  ;;  %v956_v2 = vrot.slane %v942_v55, %v2458_v32 }
 0x317   : > { %v958_v50 = vcombine.high %v901_v9, %v933_v47  ;;  %v957_v53 = vcombine.low %v901_v9, %v933_v47  ;;  %v959_v61 = vcombine.low %v908_v54, %v940_v48  ;;  %v960_v62 = vcombine.high %v908_v54, %v940_v48 }
 0x318   : > { %v961_v6 = vcombine.low %v917_v1, %v949_v56  ;;  %v962_v8 = vcombine.high %v917_v1, %v949_v56  ;;  %v963_v13 = vcombine.low %v924_v10, %v956_v2  ;;  %v964_v14 = vcombine.high %v924_v10, %v956_v2 }
 0x319   : > { %v969_v57 = vsel %vm965_vm6, %v958_v50, -inf  ;;  %v966_v60 = vsel %vm965_vm6, %v957_v53, -inf  ;;  %v972_v3 = vsel %vm965_vm6, %v959_v61, -inf  ;;  %v975_v5 = vsel %vm965_vm6, %v960_v62, -inf }
 0x31a   : > { %970 = vmax.xlane.f32.xlu0 %v969_v57  ;;  %967 = vmax.xlane.f32.xlu1 %v966_v60  ;;  %v978_v11 = vsel %vm965_vm6, %v961_v6, -inf  ;;  %v981_v12 = vsel %vm965_vm6, %v962_v8, -inf  ;;  %v984_v15 = vsel %vm965_vm6, %v963_v13, -inf  ;;  %v987_v16 = vsel %vm965_vm6, %v964_v14, -inf }
 0x31e   : > { %973 = vmax.xlane.f32.xlu0 %v972_v3  ;;  %976 = vmax.xlane.f32.xlu1 %v975_v5  ;;  %v1533_v5 = vld [vmem:[%s2629_s6 + $0x2] ss:$0 sm:$0xff] }
 0x322   : > { %979 = vmax.xlane.f32.xlu0 %v978_v11  ;;  %982 = vmax.xlane.f32.xlu1 %v981_v12 }
 0x326   : > { %985 = vmax.xlane.f32.xlu0 %v984_v15  ;;  %988 = vmax.xlane.f32.xlu1 %v987_v16 }
 0x3a7   : > { %v971_v20 = vpop.xlane.xlu0 %970  ;;  %v968_v21 = vpop.xlane.xlu1 %967 }
 0x3a8   : > { %v991_v22 = vsub.f32 %v958_v50, %v971_v20  ;;  %v990_v23 = vsub.f32 %v957_v53, %v968_v21 }
 0x3aa   : > { %v1000_v26 = vmul.f32 1.442695, %v991_v22  ;;  %v998_v27 = vmul.f32 1.442695, %v990_v23 }
 0x3ab   : > { %v974_v28 = vpop.xlane.xlu0 %973  ;;  %v977_v29 = vpop.xlane.xlu1 %976 }
 0x3ac   : > { %1795 = vpow2.f32 %v1000_v26  ;;  %v992_v30 = vsub.f32 %v959_v61, %v974_v28  ;;  %v993_v31 = vsub.f32 %v960_v62, %v977_v29 }
 0x3ad   : > { %1797 = vpow2.f32 %v998_v27 }
 0x3ae   : > { %v1002_v33 = vmul.f32 1.442695, %v992_v30  ;;  %v1004_v34 = vmul.f32 1.442695, %v993_v31 }
 0x3af   : > { %v980_v35 = vpop.xlane.xlu0 %979  ;;  %v983_v36 = vpop.xlane.xlu1 %982 }
 0x3b0   : > { %1799 = vpow2.f32 %v1002_v33  ;;  %v994_v4 = vsub.f32 %v961_v6, %v980_v35  ;;  %v995_v37 = vsub.f32 %v962_v8, %v983_v36 }
 0x3b1   : > { %1801 = vpow2.f32 %v1004_v34 }
 0x3b2   : > { %v1006_v38 = vmul.f32 1.442695, %v994_v4  ;;  %v1008_v39 = vmul.f32 1.442695, %v995_v37 }
 0x3b3   : > { %v986_v40 = vpop.xlane.xlu0 %985  ;;  %v989_v43 = vpop.xlane.xlu1 %988 }
 0x3b4   : > { %1803 = vpow2.f32 %v1006_v38  ;;  %v996_v44 = vsub.f32 %v963_v13, %v986_v40  ;;  %v997_v45 = vsub.f32 %v964_v14, %v989_v43 }
 0x3b5   : > { %1805 = vpow2.f32 %v1008_v39 }
 0x3b6   : > { %v2488_v46 = vpop.eup %1795  ;;  %v1010_v9 = vmul.f32 1.442695, %v996_v44  ;;  %v1012_v47 = vmul.f32 1.442695, %v997_v45 }
 0x3b7   : > { %v2490_v48 = vpop.eup %1797  ;;  %v1017_v49 = vsel %vm965_vm6, %v2488_v46, 0.0 }
 0x3b8   : > { %1807 = vpow2.f32 %v1010_v9  ;;  %1018 = vadd.xlane.f32.xlu1 %v1017_v49  ;;  %v1014_v50 = vsel %vm965_vm6, %v2490_v48, 0.0 }
 0x3b9   : > { %1809 = vpow2.f32 %v1012_v47  ;;  %1015 = vadd.xlane.f32.xlu0 %v1014_v50 }
 0x3ba   : > { %v2496_v53 = vpop.eup %1799 }
 0x3bb   : > { %v2498_v54 = vpop.eup %1801  ;;  %v1020_v55 = vsel %vm965_vm6, %v2496_v53, 0.0 }
 0x3bc   : > { %v1023_v56 = vsel %vm965_vm6, %v2498_v54, 0.0 }
 0x3bd   : > { %1021 = vadd.xlane.f32.xlu0 %v1020_v55  ;;  %1024 = vadd.xlane.f32.xlu1 %v1023_v56 }
 0x3be   : > { %v2504_v57 = vpop.eup %1803 }
 0x3bf   : > { %v2506_v60 = vpop.eup %1805  ;;  %v1026_v61 = vsel %vm965_vm6, %v2504_v57, 0.0 }
 0x3c0   : > { %v1029_v62 = vsel %vm965_vm6, %v2506_v60, 0.0 }
 0x3c1   : > { %1027 = vadd.xlane.f32.xlu0 %v1026_v61  ;;  %1030 = vadd.xlane.f32.xlu1 %v1029_v62 }
 0x3c2   : > { %v2512_v63 = vpop.eup %1807 }
 0x3c3   : > { %v2514_v1 = vpop.eup %1809  ;;  %v1032_v2 = vsel %vm965_vm6, %v2512_v63, 0.0 }
 0x3c4   : > { %v1035_v3 = vsel %vm965_vm6, %v2514_v1, 0.0 }
 0x3c5   : > { %1033 = vadd.xlane.f32.xlu0 %v1032_v2  ;;  %1036 = vadd.xlane.f32.xlu1 %v1035_v3 }
 0x3e6   : > { %v588_v6 = vpop.f32.mrb[4].mxu0 }
 0x3e7   : > { %v589_v8 = vadd.f32 %v1533_v5, %v588_v6  ;;  %v1607_v10 = vpop.f32.mrb[5].mxu0 }
 0x3e8   : > { %v591_v11 = vpop.f32.mrb[6].mxu0 }
 0x3e9   : > { %v702_v12 = vmul.f32 %v2407_v24, %v589_v8  ;;  %v703_v13 = vmul.f32 %v2409_v25, %v589_v8  ;;  %v704_v14 = vmul.f32 %v2419_v41, %v589_v8  ;;  %v705_v15 = vmul.f32 %v2421_v42, %v589_v8  ;;  %v1608_v16 = vpop.f32.mrb[7].mxu0 }
 0x3ea   : > { %v706_v20 = vmul.f32 %v2428_v51, %v589_v8  ;;  %v707_v21 = vmul.f32 %v2430_v52, %v589_v8  ;;  %v708_v24 = vmul.f32 %v2437_v58, %v589_v8  ;;  %v709_v25 = vmul.f32 %v2439_v59, %v589_v8 }
 0x3eb   : > { %v1672_v17 = vpack.c.bf16 %v703_v13, %v702_v12  ;;  %v1675_v18 = vpack.c.bf16 %v705_v15, %v704_v14 }
 0x3ec   : > { %v1678_v22 = vpack.c.bf16 %v707_v21, %v706_v20  ;;  %v1681_v41 = vpack.c.bf16 %v709_v25, %v708_v24 }
 0x3ed   : > { %1673 = vmatpush3.bf16.msra.mxu0 %v1672_v17 }
 0x3ee   : > { %1674 = vmatprep.subr.bf16.mxu0 %v2060_v7 }
 0x3f1   : > { %1676 = vmatpush3.bf16.msra.mxu0 %v1675_v18 }
 0x3f2   : > { %1677 = vmatprep.subr.bf16.mxu0 %v2060_v7 }
 0x3f5   : > { %1679 = vmatpush3.bf16.msra.mxu0 %v1678_v22 }
 0x3f6   : > { %1680 = vmatprep.subr.bf16.mxu0 %v2060_v7 }
 0x3f9   : > { %1682 = vmatpush3.bf16.msra.mxu0 %v1681_v41 }
 0x3fa   : > { %1647 = vmatprep.subr.bf16.mxu0 %v2058_v0 }
 0x445   : > { %v1019_v42 = vpop.xlane.xlu1 %1018 }
 0x446   : > { %v1016_v51 = vpop.xlane.xlu0 %1015  ;;  %1811 = vrcp.f32 %v1019_v42 }
 0x447   : > { %1813 = vrcp.f32 %v1016_v51 }
 0x44a   : > { %v1022_v52 = vpop.xlane.xlu0 %1021  ;;  %v1025_v23 = vpop.xlane.xlu1 %1024 }
 0x44b   : > { %1815 = vrcp.f32 %v1022_v52 }
 0x44c   : > { %1817 = vrcp.f32 %v1025_v23 }
 0x44e   : > { %v1028_v58 = vpop.xlane.xlu0 %1027  ;;  %v1031_v26 = vpop.xlane.xlu1 %1030 }
 0x44f   : > { %1819 = vrcp.f32 %v1028_v58 }
 0x450   : > { %1821 = vrcp.f32 %v1031_v26  ;;  %v1812_v28 = vpop.eup %1811 }
 0x451   : > { %v1814_v7 = vpop.eup %1813  ;;  %v1047_v35 = vmul.f32 %v1812_v28, %v2488_v46 }
 0x452   : > { %v1034_v59 = vpop.xlane.xlu0 %1033  ;;  %v1037_v27 = vpop.xlane.xlu1 %1036  ;;  %v1046_v34 = vmul.f32 %v1814_v7, %v2490_v48 }
 0x453   : > { %1823 = vrcp.f32 %v1034_v59 }
 0x454   : > { %1825 = vrcp.f32 %v1037_v27 }
 0x455   : > { %v1816_v29 = vpop.eup %1815 }
 0x456   : > { %v1818_v30 = vpop.eup %1817  ;;  %v1048_v31 = vmul.f32 %v1816_v29, %v2496_v53 }
 0x457   : > { %v1049_v33 = vmul.f32 %v1818_v30, %v2498_v54 }
 0x458   : > { %v1054_v4 = vcombine.low %v1046_v34, %v1048_v31  ;;  %v1055_v45 = vcombine.high %v1046_v34, %v1048_v31  ;;  %v1793_v31 = vld [vmem:[%s2628_s5] sm:$0xff]  }
 0x459   : > { %v1820_v36 = vpop.eup %1819  ;;  %v1070_v37 = vcombine.low %v1047_v35, %v1049_v33  ;;  %v1071_v9 = vcombine.high %v1047_v35, %v1049_v33 }
 0x45a   : > { %v1822_v38 = vpop.eup %1821  ;;  %v1050_v43 = vmul.f32 %v1820_v36, %v2504_v57  ;;  %v1062_v48 = vrot.slane %v1054_v4, %v2453_v19  ;;  %v1069_v57 = vrot.slane %v1055_v45, %v2453_v19  ;;  %v1794_v36 = vld [vmem:[%s2628_s5 + $0x8] sm:$0xff]  }
 0x45b   : > { %v1051_v47 = vmul.f32 %v1822_v38, %v2506_v60  ;;  %v1078_v46 = vrot.slane %v1070_v37, %v2453_v19  ;;  %v1085_v61 = vrot.slane %v1071_v9, %v2453_v19 }
 0x45d   : > { %v1824_v39 = vpop.eup %1823  ;;  %v1134_v8 = vcombine.low %v1069_v57, %v1085_v61  ;;  %v1135_v20 = vcombine.high %v1069_v57, %v1085_v61 }
 0x45e   : > { %v1826_v40 = vpop.eup %1825  ;;  %v1052_v44 = vmul.f32 %v1824_v39, %v2512_v63  ;;  %v1119_v63 = vcombine.high %v1062_v48, %v1078_v46  ;;  %v1547_v39 = vld [vmem:[%s2630_s7] ss:$0 sm:$0xff] }
 0x45f   : > { %v1053_v49 = vmul.f32 %v1826_v40, %v2514_v1  ;;  %v1118_v1 = vcombine.low %v1062_v48, %v1078_v46  ;;  %v1149_v25 = vrot.slane %v1135_v20, %v2458_v32 }
 0x460   : > { %v1086_v50 = vcombine.low %v1050_v43, %v1052_v44  ;;  %v1087_v53 = vcombine.high %v1050_v43, %v1052_v44  ;;  %v1133_v10 = vrot.slane %v1119_v63, %v2458_v32 }
 0x461   : > { %v1102_v54 = vcombine.low %v1051_v47, %v1053_v49  ;;  %v1103_v55 = vcombine.high %v1051_v47, %v1053_v49  ;;  %v1126_v12 = vrot.slane %v1118_v1, %v2458_v32 }
 0x462   : > { %v1094_v56 = vrot.slane %v1086_v50, %v2453_v19  ;;  %v1101_v62 = vrot.slane %v1087_v53, %v2453_v19 }
 0x463   : > { %v1110_v60 = vrot.slane %v1102_v54, %v2453_v19  ;;  %v1117_v2 = vrot.slane %v1103_v55, %v2453_v19  ;;  %v1142_v19 = vrot.slane %v1134_v8, %v2458_v32 }
 0x465   : > { %v1151_v3 = vcombine.high %v1094_v56, %v1110_v60  ;;  %v1150_v5 = vcombine.low %v1094_v56, %v1110_v60  ;;  %v1166_v6 = vcombine.low %v1101_v62, %v1117_v2  ;;  %v1167_v17 = vcombine.high %v1101_v62, %v1117_v2 }
 0x467   : > { %v1165_v11 = vrot.slane %v1151_v3, %v2458_v32  ;;  %v1158_v13 = vrot.slane %v1150_v5, %v2458_v32  ;;  %v1174_v16 = vrot.slane %v1166_v6, %v2458_v32  ;;  %v1181_v24 = vrot.slane %v1167_v17, %v2458_v32 }
 0x469   : > { %v1184_v14 = vcombine.low %v1133_v10, %v1165_v11  ;;  %v1183_v15 = vcombine.high %v1126_v12, %v1158_v13  ;;  %v1182_v18 = vcombine.low %v1126_v12, %v1158_v13  ;;  %v1185_v21 = vcombine.high %v1133_v10, %v1165_v11 }
 0x46a   : > { %v1186_v22 = vcombine.low %v1142_v19, %v1174_v16  ;;  %v1187_v41 = vcombine.high %v1142_v19, %v1174_v16  ;;  %v1188_v42 = vcombine.low %v1149_v25, %v1181_v24  ;;  %v1189_v51 = vcombine.high %v1149_v25, %v1181_v24 }
 0x46b   : > { %1195 = vrot.lane.b32.xlu1 %v1184_v14, %s2071_s13  ;;  %1191 = vrot.lane.b32.xlu0 %v1183_v15, %s2072_s15 }
 0x46f   : > { %1199 = vrot.lane.b32.xlu1 %v1185_v21, %s2073_s16  ;;  %1203 = vrot.lane.b32.xlu0 %v1186_v22, %s2074_s11  ;;  %s2579_s16 = scalar_lea.hbm %s2631_s8, %s1552_s12  ;;  %s1374_s11 = scalar_lea.sflag [#allocation4], %s2352_s2 }
 0x473   : > { %1207 = vrot.lane.b32.xlu1 %v1187_v41, %s2075_s27  ;;  %1211 = vrot.lane.b32.xlu0 %v1188_v42, %s2076_s19  ;;  %s1975_s27 = sshll.u32 %s2078_s4, 4  ;;  %s1976_s27 = int_to_ptr.vmem [resolvable:$false] %s1975_s27 }
 0x474   : > { %s1977_s19 = scalar_lea.vmem %s1976_s27, 128  ;;  %p1978_p0 = scmp.lt.s32.totalorder %s2581_s14, %s1976_s27 }
 0x475   : > { %p1979_p8 = scmp.lt.s32.totalorder %s1977_s19, %s1971_s9 }
 0x477   : > { %1215 = vrot.lane.b32.xlu1 %v1189_v51, %s2077_s24  ;;  %p1980_p6 = por %p1979_p8, %p1978_p0 }
 0x479   : > { %p1981_p10 = pnand %p1980_p6, %p1974_p4 }
 0x4dd   : > { %v1196_v52 = vpop.permute.xlu1 %1195  ;;  %v1192_v23 = vpop.permute.xlu0 %1191 }
 0x4de   : > { %v1218_v58 = vsel %vm965_vm6, %v1182_v18, %v1192_v23 }
 0x4df   : > { %v1220_v59 = vsel %vm1219_vm7, %v1218_v58, %v1196_v52 }
 0x4e1   : > { %v1200_v26 = vpop.permute.xlu1 %1199  ;;  %v1204_v27 = vpop.permute.xlu0 %1203 }
 0x4e2   : > { %v1222_v28 = vsel %vm1221_vm8, %v1220_v59, %v1200_v26 }
 0x4e3   : > { %v1223_v32 = vsel %vm425_vm1, %v1222_v28, %v1204_v27 }
 0x4e5   : > { %v1208_v7 = vpop.permute.xlu1 %1207  ;;  %v1212_v30 = vpop.permute.xlu0 %1211 }
 0x4e6   : > { %v1225_v29 = vsel %vm1224_vm9, %v1223_v32, %v1208_v7 }
 0x4e7   : > { %v1227_v33 = vsel %vm1226_vm10, %v1225_v29, %v1212_v30 }
 0x4e9   : > { %v1216_v34 = vpop.permute.xlu1 %1215 }
 0x4ea   : > { %v1229_v35 = vsel %vm1228_vm11, %v1227_v33, %v1216_v34 }
 0x4eb   : > { %1645 = vmatmul.mubr.msk.f32.vlgmr.msra.gmra.mrb[8].mxu0 %vm1230_vm12, %v1229_v35 }
 0x4ec   : > { %1648 = vmatpush3.bf16.msra.mxu0 %v1793_v31  ;;  %1651 = vmatprep.mubr.msk.bf16.mxu0 %vm2059_vm0, %v2058_v0 }
 0x4ed   : > { %1649 = vmatprep.subr.bf16.mxu0 %v2058_v0 }
 0x4f0   : > { %1650 = vmatpush3.bf16.msra.mxu0 %v1794_v36 }
 0x5be   : > { %v1300_v4 = vpop.f32.mrb[8].mxu0 }
 0x5bf   : > { %v1304_v37 = vpack.c.bf16 %v1300_v4, %v1300_v4  ;;  %v1646_v38 = vpop.f32.mrb[9].mxu0 }
 0x5c1   : > { %1652 = vmatmul.mubr.msk.bf16.vlgmr.msra.gmra.mrb[12].mxu0 %vm425_vm1, %v1304_v37 }
 0x694   : > { %v1365_v40 = vpop.f32.mrb[12].mxu0 }
 0x695   : > { %v1366_v0 = vadd.f32 %v1547_v39, %v1365_v40  ;;  %v1653_v43 = vpop.f32.mrb[13].mxu0 }
 0x696   : > { %v1368_v44 = vpop.f32.mrb[14].mxu0 }
 0x697   : > { %v1371_v45 = vpack.c.bf16 %v1366_v0, %v1366_v0  ;;  %v1654_v9 = vpop.f32.mrb[15].mxu0 }
 0x699   : > { %1372 = vst [vmem:[%s400_s21] sm:$0xf] %v1371_v45 }
 0x69a   : > { %1984 = shalt.err (!%p1981_p10)
}
 0x69b   : > { %s1985_s2 = scalar_lea.hbm %s2579_s16, 64  ;;  %s1989_s18 = scalar_lea.hbm %s2631_s8, 128 }
 0x69c   : > { %p1986_p13 = scmp.ne.s32.totalorder %s2579_s16, %s1985_s2  ;;  %p1990_p9 = scmp.lt.u32.totalorder %s2579_s16, %s2631_s8 }
 0x69d   : > { %p1991_p3 = scmp.lt.u32.totalorder %s1989_s18, %s1985_s2  ;;  %p1993_p12 = scmp.lt.u32.totalorder %s1985_s2, %s2579_s16 }
 0x69e   : > { %p1987_p5 = pnand %p1986_p13, %p2662_p1 }
 0x69f   : > { %p1992_p7 = por %p1991_p3, %p1990_p9 }
 0x6a0   : > { %p1988_p11 = pneg %p1987_p5 }
 0x6a1   : > { %p1994_p2 = por %p1993_p12, %p1992_p7 }
 0x6a3   : > { %p1995_p4 = pnand %p1994_p2, %p1988_p11 }
 0x6a5   : > { %1998 = shalt.err (!%p1995_p4)
}
 0x6a6   : > { %1699 = dma.vmem_to_hbm [thread:$0]  (%p2662_p1), %s2581_s14, 64, %s2579_s16, %s1374_s11  }
 0x6a7 PF: > { %s2663_s10 = sld [smem:[#allocation17_spill]]  ;;  %s2664_s17 = sld [smem:[#allocation18_spill]] }
 0x6a8   : > { %p2666_p8 = scmp.ge.s32.totalorder %s2049_s30, 2 }
 0x6ad   : > { %s1399_s12 = sand.u32 1, %s2663_s10   ;;  %p2665_p0 = scmp.ne.s32.totalorder %s2664_s17, 0 }
 0x6ae   : > { %s1400_s21 = scalar_lea.sflag [#allocation4], %s1399_s12 }
 0x6af   : > { %p1719_p6 = pnand %p2666_p8, %p2665_p0 }
 0x6b1   : > { %2032 = dma.done.wait (!%p1719_p6), %s1400_s21, 64  }
 0x6b2   : > { %2034 = vsyncadd (!%p1719_p6), %s1400_s21, 4294967232  ;;  %p25_p10 = scmp.ge.s32.totalorder %s2264_s26, 4   ;;  %s2667_s27 = smov %s2041_s28 }
 0x6b3   : > { %s2668_s28 = smov %s2045_s29  ;;  %s2669_s29 = smov %s2274_s22 }
 0x6b4   : > { %s2670_s30 = smov %s2264_s26  ;;  %27 = sbr.rel (!%p25_p10) target bundleno = 12 (0xc), region = 122 }
 0x6bb   :  { %1405 = vsyncpa [#allocation3], 1 }
 0x6bc   :  { %1407 = vsyncpa [#allocation3 + $0x1], 1 }
 0x6bd   :  { %1408 = vsyncpa [#allocation6], 1 }
 0x6be   :  { %1410 = vsyncpa [#allocation6 + $0x1], 1 }
 0x6bf   :  { %1411 = vsyncpa [#allocation9], 1 }
 0x6c0   :  { %1412 = vsyncpa [#allocation4], 1 }
 0x6c1   :  { %1414 = vsyncpa [#allocation4 + $0x1], 1 }

</bundles_post_ra>
